<compile_context>
chip_gen: v5e
topology: v5e:2x2
jax: 0.10.0
libtpu: 0.0.40
codegen_flags: <defaults>
</compile_context>

<pallas_src>
import functools

import jax
import jax.numpy as jnp
from jax.experimental import pallas as pl
from jax.experimental.pallas import tpu as pltpu


# ---------------------------------------------------------------------------
# Kernel 1: fused QKV projection (tiled matmul + bias)
# ---------------------------------------------------------------------------
def _qkv_matmul_kernel(x_ref, w_ref, b_ref, o_ref, acc_ref):
    # grid = (row tiles, col tiles, k tiles); k is the reduction axis (last).
    @pl.when(pl.program_id(2) == 0)
    def _init():
        # Fold the bias into the accumulator init (no separate epilogue add).
        acc_ref[...] = jnp.broadcast_to(b_ref[...], acc_ref.shape).astype(jnp.float32)

    acc_ref[...] += jnp.dot(
        x_ref[...], w_ref[...], preferred_element_type=jnp.float32
    )

    @pl.when(pl.program_id(2) == pl.num_programs(2) - 1)
    def _finalize():
        o_ref[...] = acc_ref[...].astype(o_ref.dtype)


# ---------------------------------------------------------------------------
# Kernel 2: fused per-head attention (flash-style online softmax) + out proj
# ---------------------------------------------------------------------------
def _attn_proj_kernel(qrow_ref, kv_ref, wp_ref, bp_ref, o_ref,
                      m_sc, l_sc, acc_sc, *, head, hd):
    # grid = (q row tiles, kv row tiles); kv axis is the online-softmax reduction.
    c = head * hd
    j = pl.program_id(1)
    scale = hd ** (-0.5)

    @pl.when(j == 0)
    def _init():
        m_sc[...] = jnp.full_like(m_sc, -jnp.inf)
        l_sc[...] = jnp.zeros_like(l_sc)
        acc_sc[...] = jnp.zeros_like(acc_sc)

    # Fused qkv column layout: [ q | k | v ], each C wide, head-major inside
    # (head h occupies columns h*hd:(h+1)*hd of its third) -- matches
    # torch's reshape(N, head, hd) / reshape(N, 2, head, hd) exactly.
    for h in range(head):
        q_sl = slice(h * hd, (h + 1) * hd)
        k_sl = slice(c + h * hd, c + (h + 1) * hd)
        v_sl = slice(2 * c + h * hd, 2 * c + (h + 1) * hd)

        qh = qrow_ref[:, q_sl] * scale          # scale folded into q (O(N*hd))
        kh = kv_ref[:, k_sl]
        vh = kv_ref[:, v_sl]

        # q @ k^T as a transposed contraction (no materialized k.T).
        s = jax.lax.dot_general(
            qh, kh, (((1,), (1,)), ((), ())),
            preferred_element_type=jnp.float32,
        )                                        # (tq, tkv) f32

        m_prev = m_sc[:, h:h + 1]
        m_new = jnp.maximum(m_prev, jnp.max(s, axis=-1, keepdims=True))
        alpha = jnp.exp(m_prev - m_new)
        p = jnp.exp(s - m_new)
        l_sc[:, h:h + 1] = alpha * l_sc[:, h:h + 1] + jnp.sum(p, axis=-1, keepdims=True)
        acc_sc[:, q_sl] = alpha * acc_sc[:, q_sl] + jnp.dot(
            p.astype(vh.dtype), vh, preferred_element_type=jnp.float32
        )
        m_sc[:, h:h + 1] = m_new

    @pl.when(j == pl.num_programs(1) - 1)
    def _finalize():
        # Normalize each head in place (EUP reciprocal), then run the output
        # projection on the lane-dense (tq, C) tile without leaving VMEM.
        for h in range(head):
            sl = slice(h * hd, (h + 1) * hd)
            acc_sc[:, sl] = acc_sc[:, sl] * pl.reciprocal(
                l_sc[:, h:h + 1], approx=True
            )
        o = acc_sc[...].astype(wp_ref.dtype)
        out = jnp.dot(o, wp_ref[...], preferred_element_type=jnp.float32) + bp_ref[...]
        o_ref[...] = out.astype(o_ref.dtype)


# ---------------------------------------------------------------------------
# Wrappers
# ---------------------------------------------------------------------------
def _pick_tile(dim, target):
    """Use the target tile when it evenly divides the dim, else the full dim."""
    if dim <= target or dim % target != 0:
        return dim
    return target


def fused_qkv_projection(x, w_qkv, b_qkv, *, tm=256, tn=256, tk=512,
                         out_dtype=jnp.bfloat16):
    n, c = x.shape
    c3 = w_qkv.shape[1]
    tm, tn, tk = _pick_tile(n, tm), _pick_tile(c3, tn), _pick_tile(c, tk)
    return pl.pallas_call(
        _qkv_matmul_kernel,
        out_shape=jax.ShapeDtypeStruct((n, c3), out_dtype),
        grid_spec=pltpu.PrefetchScalarGridSpec(
            num_scalar_prefetch=0,
            grid=(n // tm, c3 // tn, c // tk),
            in_specs=[
                pl.BlockSpec((tm, tk), lambda i, j, k: (i, k)),
                pl.BlockSpec((tk, tn), lambda i, j, k: (k, j)),
                pl.BlockSpec((1, tn), lambda i, j, k: (0, j)),
            ],
            out_specs=pl.BlockSpec((tm, tn), lambda i, j, k: (i, j)),
            scratch_shapes=[pltpu.VMEM((tm, tn), jnp.float32)],
        ),
        compiler_params=pltpu.CompilerParams(
            dimension_semantics=("parallel", "parallel", "arbitrary"),
            vmem_limit_bytes=32 * 1024 * 1024,
        ),
    )(x, w_qkv, b_qkv)


def fused_attention_projection(qkv, w_proj, b_proj, *, head, tq=256, tkv=512,
                               out_dtype=jnp.float32):
    n, c3 = qkv.shape
    c = c3 // 3
    hd = c // head
    tq, tkv = _pick_tile(n, tq), _pick_tile(n, tkv)
    kernel = functools.partial(_attn_proj_kernel, head=head, hd=hd)
    return pl.pallas_call(
        kernel,
        out_shape=jax.ShapeDtypeStruct((n, c), out_dtype),
        grid_spec=pltpu.PrefetchScalarGridSpec(
            num_scalar_prefetch=0,
            grid=(n // tq, n // tkv),
            in_specs=[
                # Query-row view of the fused qkv buffer (index constant along
                # the kv axis -> block stays resident, no re-DMA per kv step).
                pl.BlockSpec((tq, c3), lambda i, j: (i, 0)),
                # KV-row view of the same buffer, streamed along the kv axis.
                pl.BlockSpec((tkv, c3), lambda i, j: (j, 0)),
                pl.BlockSpec((c, c), lambda i, j: (0, 0)),
                pl.BlockSpec((1, c), lambda i, j: (0, 0)),
            ],
            out_specs=pl.BlockSpec((tq, c), lambda i, j: (i, 0)),
            scratch_shapes=[
                pltpu.VMEM((tq, head), jnp.float32),   # running max per head
                pltpu.VMEM((tq, head), jnp.float32),   # running denominator
                pltpu.VMEM((tq, c), jnp.float32),      # running numerator (lane-dense)
            ],
        ),
        compiler_params=pltpu.CompilerParams(
            dimension_semantics=("parallel", "arbitrary"),
            vmem_limit_bytes=32 * 1024 * 1024,
        ),
    )(qkv, qkv, w_proj, b_proj)


def attention_forward(x, params, head, *, compute_dtype=jnp.bfloat16):
    """Pallas forward pass equivalent to Attention.forward(x) for x:(N, C)."""
    # Fuse the q and kv projections into a single (C, 3C) matmul.
    w_qkv = jnp.concatenate([params["wq"], params["wkv"]], axis=1).astype(compute_dtype)
    b_qkv = jnp.concatenate([params["bq"], params["bkv"]])[None, :].astype(jnp.float32)

    qkv = fused_qkv_projection(
        x.astype(compute_dtype), w_qkv, b_qkv, out_dtype=compute_dtype
    )                                                                  # (N, 3C)

    out = fused_attention_projection(
        qkv,
        params["wproj"].astype(compute_dtype),
        params["bproj"][None, :].astype(jnp.float32),
        head=head,
        out_dtype=jnp.float32,
    )                                                                  # (N, C)
    return out


# ---------------------------------------------------------------------------
# Pure-JAX reference (for validation)
# ---------------------------------------------------------------------------
def attention_reference(x, params, head):
    n, c = x.shape
    hd = c // head
    scale = hd ** (-0.5)
    q = x @ params["wq"] + params["bq"]
    kv = x @ params["wkv"] + params["bkv"]
    q = q.reshape(n, head, hd).transpose(1, 0, 2)
    k = kv[:, :c].reshape(n, head, hd).transpose(1, 0, 2)
    v = kv[:, c:].reshape(n, head, hd).transpose(1, 0, 2)
    s = jnp.einsum("hnd,hmd->hnm", q, k) * scale
    p = jax.nn.softmax(s, axis=-1)
    o = jnp.einsum("hnm,hmd->hnd", p, v).transpose(1, 0, 2).reshape(n, c)
    return o @ params["wproj"] + params["bproj"]


# ---------------------------------------------------------------------------
# Main
# ---------------------------------------------------------------------------
if __name__ == "__main__":
    N, C, HEAD = 8, 32, 4

    key = jax.random.PRNGKey(0)
    k_x, k_wq, k_bq, k_wkv, k_bkv, k_wp, k_bp = jax.random.split(key, 7)

    x = jax.random.normal(k_x, (N, C), dtype=jnp.float32)

    # Deterministic parameter init (weights stored (in, out)).
    params = {
        "wq": jax.random.normal(k_wq, (C, C), dtype=jnp.float32) * 0.1,
        "bq": jax.random.normal(k_bq, (C,), dtype=jnp.float32) * 0.1,
        "wkv": jax.random.normal(k_wkv, (C, 2 * C), dtype=jnp.float32) * 0.1,
        "bkv": jax.random.normal(k_bkv, (2 * C,), dtype=jnp.float32) * 0.1,
        "wproj": jax.random.normal(k_wp, (C, C), dtype=jnp.float32) * 0.1,
        "bproj": jax.random.normal(k_bp, (C,), dtype=jnp.float32) * 0.1,
    }

    ref = attention_reference(x, params, HEAD)

    # Full-f32 run: tight semantic check against the module's math.
    out_f32 = jax.block_until_ready(
        attention_forward(x, params, HEAD, compute_dtype=jnp.float32)
    )
    assert out_f32.shape == (N, C)
    assert jnp.allclose(out_f32, ref, atol=2e-3, rtol=2e-3), "f32 mismatch vs reference"

    # Default bf16-operand / f32-accumulate run (MXU-friendly): loose check.
    out_bf16 = jax.block_until_ready(attention_forward(x, params, HEAD))
    assert out_bf16.shape == (N, C)
    assert jnp.allclose(out_bf16, ref, atol=5e-2, rtol=5e-2), "bf16 mismatch vs reference"

    print("KERNEL_OK")
</pallas_src>

<mosaic_0001>
module attributes {stable_mosaic.version = 11 : i64} {
  func.func @_qkv_matmul_kernel(%arg0: i32, %arg1: i32, %arg2: i32, %arg3: memref<8x32xf32, #tpu.memory_space<vmem>>, %arg4: memref<32x96xf32, #tpu.memory_space<vmem>>, %arg5: memref<1x96xf32, #tpu.memory_space<vmem>>, %arg6: memref<8x96xf32, #tpu.memory_space<vmem>>, %arg7: memref<8x96xf32, #tpu.memory_space<vmem>>) attributes {dimension_semantics = [#tpu.dimension_semantics<parallel>, #tpu.dimension_semantics<parallel>, #tpu.dimension_semantics<arbitrary>], iteration_bounds = array<i64: 1, 1, 1>, scalar_prefetch = 0 : i64, scratch_operands = 1 : i64, tpu.core_type = #tpu.core_type<tc>, window_params = [{transform_indices = @transform_0, window_bounds = array<i64: 8, 32>}, {transform_indices = @transform_1, window_bounds = array<i64: 32, 96>}, {transform_indices = @transform_2, window_bounds = array<i64: 1, 96>}, {transform_indices = @transform_3, window_bounds = array<i64: 8, 96>}]} {
    %c0_i32 = arith.constant 0 : i32
    %0 = arith.cmpi eq, %arg2, %c0_i32 : i32
    %1 = arith.extui %0 : i1 to i32
    %c0_i32_0 = arith.constant 0 : i32
    %2 = arith.cmpi ne, %1, %c0_i32_0 : i32
    scf.if %2 {
      %c0_10 = arith.constant 0 : index
      %c0_11 = arith.constant 0 : index
      %12 = vector.load %arg5[%c0_10, %c0_11] : memref<1x96xf32, #tpu.memory_space<vmem>>, vector<1x96xf32>
      %13 = vector.shape_cast %12 : vector<1x96xf32> to vector<1x96xf32>
      %14 = vector.broadcast %13 : vector<1x96xf32> to vector<8x96xf32>
      %c0_12 = arith.constant 0 : index
      %c0_13 = arith.constant 0 : index
      %15 = vector.load %arg7[%c0_12, %c0_13] : memref<8x96xf32, #tpu.memory_space<vmem>>, vector<8x96xf32>
      tpu.vector_store %arg7[%c0_12, %c0_13], %14 {strides = array<i32>} : memref<8x96xf32, #tpu.memory_space<vmem>>, vector<8x96xf32>,
    } else {
    }
    %c0 = arith.constant 0 : index
    %c0_1 = arith.constant 0 : index
    %3 = vector.load %arg7[%c0, %c0_1] : memref<8x96xf32, #tpu.memory_space<vmem>>, vector<8x96xf32>
    %c0_2 = arith.constant 0 : index
    %c0_3 = arith.constant 0 : index
    %4 = vector.load %arg3[%c0_2, %c0_3] : memref<8x32xf32, #tpu.memory_space<vmem>>, vector<8x32xf32>
    %c0_4 = arith.constant 0 : index
    %c0_5 = arith.constant 0 : index
    %5 = vector.load %arg4[%c0_4, %c0_5] : memref<32x96xf32, #tpu.memory_space<vmem>>, vector<32x96xf32>
    %cst = arith.constant dense<0.000000e+00> : vector<8x96xf32>
    %6 = tpu.matmul %4, %5, %cst {dimension_numbers = #tpu.dot_dimension_numbers<[1], [0], [0], [1], [0, 0, 1, 1], [], []>} : vector<8x32xf32>, vector<32x96xf32>, vector<8x96xf32> -> vector<8x96xf32>
    %7 = arith.addf %3, %6 : vector<8x96xf32>
    %c0_6 = arith.constant 0 : index
    %c0_7 = arith.constant 0 : index
    %8 = vector.load %arg7[%c0_6, %c0_7] : memref<8x96xf32, #tpu.memory_space<vmem>>, vector<8x96xf32>
    tpu.vector_store %arg7[%c0_6, %c0_7], %7 {strides = array<i32>} : memref<8x96xf32, #tpu.memory_space<vmem>>, vector<8x96xf32>,
    %c0_i32_8 = arith.constant 0 : i32
    %9 = arith.cmpi eq, %arg2, %c0_i32_8 : i32
    %10 = arith.extui %9 : i1 to i32
    %c0_i32_9 = arith.constant 0 : i32
    %11 = arith.cmpi ne, %10, %c0_i32_9 : i32
    scf.if %11 {
      %c0_10 = arith.constant 0 : index
      %c0_11 = arith.constant 0 : index
      %12 = vector.load %arg7[%c0_10, %c0_11] : memref<8x96xf32, #tpu.memory_space<vmem>>, vector<8x96xf32>
      %c0_12 = arith.constant 0 : index
      %c0_13 = arith.constant 0 : index
      %13 = vector.load %arg6[%c0_12, %c0_13] : memref<8x96xf32, #tpu.memory_space<vmem>>, vector<8x96xf32>
      tpu.vector_store %arg6[%c0_12, %c0_13], %12 {strides = array<i32>} : memref<8x96xf32, #tpu.memory_space<vmem>>, vector<8x96xf32>,
    } else {
    }
    return
  }
  func.func @transform_0(%arg0: i32, %arg1: i32, %arg2: i32) -> (i32, i32) {
    %c0_i32 = arith.constant 0 : i32
    return %arg0, %arg2 : i32, i32
  }
  func.func @transform_1(%arg0: i32, %arg1: i32, %arg2: i32) -> (i32, i32) {
    %c0_i32 = arith.constant 0 : i32
    return %arg2, %arg1 : i32, i32
  }
  func.func @transform_2(%arg0: i32, %arg1: i32, %arg2: i32) -> (i32, i32) {
    %c0_i32 = arith.constant 0 : i32
    %c0_i32_0 = arith.constant 0 : i32
    return %c0_i32, %arg1 : i32, i32
  }
  func.func @transform_3(%arg0: i32, %arg1: i32, %arg2: i32) -> (i32, i32) {
    %c0_i32 = arith.constant 0 : i32
    return %arg0, %arg1 : i32, i32
  }
}

</mosaic_0001>

<bundles_post_ra>
// kernel: tpu_custom_call.1
= control target key start
LH: loop header
LB: loop body
LE: loop exit
PB: predicated region body
PF: predicated region fallthrough
CT: control target
= control target key end

     0   :  { %8 = vsyncpa [#allocation4], 0  ;;  %s236_s0 = inlined_call_operand.hbm [shape: f32[8,32], index: 0, kind: input, shape index: {}]   ;;  %s237_s1 = inlined_call_operand.hbm [shape: f32[32,96], index: 1, kind: input, shape index: {}]   ;;  %s238_s2 = inlined_call_operand.vmem [shape: f32[1,96], index: 2, kind: input, shape index: {}]   ;;  %s239_s3 = inlined_call_operand.hbm [shape: f32[8,96], index: 3, kind: output, shape index: {}]  }
   0x1   :  { %9 = vsyncpa [#allocation7], 0 }
   0x2   :  { %10 = vsyncpa [#allocation5], 0  ;;  %s16_s14 = sshll.u32 %s236_s0, 4  ;;  %s196_s15 = smov [#allocation3]   ;;  %s17_s14 = int_to_ptr.hbm [resolvable:$true] %s16_s14 }
   0x3   :  { %s18_s16 = sshll.u32 %s196_s15, 4  ;;  %s26_s19 = sshll.u32 %s237_s1, 4  ;;  %s19_s16 = int_to_ptr.vmem [resolvable:$true] %s18_s16  ;;  %s27_s19 = int_to_ptr.hbm [resolvable:$true] %s26_s19 }
   0x4   :  { %21 = dma.hbm_to_vmem [thread:$0]  %s17_s14, 128, %s19_s16, [#allocation4]  }
   0x5   :  { %s197_s20 = smov [#allocation6]   ;;  %s198_s22 = smov 128  }
   0x6   :  { %s28_s21 = sshll.u32 %s197_s20, 4  ;;  %s199_s23 = smov 8   ;;  %s29_s21 = int_to_ptr.vmem [resolvable:$true] %s28_s21 }
   0x7   :  { %34 = dma.hbm_to_vmem [thread:$0]  %s27_s19, 512, %s29_s21, [#allocation7], %s198_s22, %s198_s22, %s199_s23  }
   0x8   :  { %190 = dma.done.wait [#allocation4], 128  }
   0x9   :  { %191 = vsyncadd [#allocation4], 4294967168 }
   0xa   :  { %192 = dma.done.wait [#allocation7], 512  }
   0xb   :  { %193 = vsyncadd [#allocation7], 4294966784  ;;  %v60_v0 = vld [vmem:[#allocation6 + $0x18] sm:$0xff]  ;;  %v59_v1 = vld [vmem:[#allocation6 + $0x10] sm:$0xff]  ;;  %vm53_vm0 = vcmask 785408   ;;  %vm61_vm1 = vcmask 261120  }
   0xc   :  { %77 = vmatpush.msra.mxu0 %v60_v0  ;;  %v58_v2 = vld [vmem:[#allocation6 + $0x8] sm:$0xff]  ;;  %v117_v3 = vld [vmem:[%s238_s2] ss:$0 sm:$0xff]  ;;  %v57_v4 = vld [vmem:[#allocation6] sm:$0xff]  ;;  %s200_s1 = smov [#allocation8]   ;;  %s100_s2 = sshll.u32 %s239_s3, 4  ;;  %s101_s2 = int_to_ptr.hbm [resolvable:$true] %s100_s2 }
   0xd   :  { %54 = vst.msk [vmem:[#allocation2] sm:$0xff] %vm53_vm0, %v117_v3  ;;  %v56_v5 = vld [vmem:[#allocation3] sm:$0xff]  ;;  %s98_s25 = sshll.u32 %s200_s1, 4  ;;  %s99_s25 = int_to_ptr.vmem [resolvable:$true] %s98_s25 }
   0xe   :  { %78 = vmatpush.msra.mxu0 %v59_v1 }
  0x10   :  { %79 = vmatpush.msra.mxu0 %v58_v2 }
  0x12   :  { %80 = vmatpush.msra.mxu0 %v57_v4 }
  0x13   :  { %111 = vmatmul.msk.f32.vlgmr.msra.gmra.mxu0 %vm61_vm1, %v56_v5 }
  0x14   :  { %v55_v6 = vld [vmem:[#allocation2] sm:$0xff] }
  0x90   :  { %v82_v7 = vpop.f32.mrf.mxu0 }
  0x91   :  { %v85_v8 = vadd.f32 %v82_v7, %v55_v6 }
  0x93   :  { %87 = vst.msk [vmem:[#allocation2] sm:$0xff] %vm53_vm0, %v85_v8 }
  0x9a   :  { %v91_v9 = vld [vmem:[#allocation2] sm:$0xff] }
  0x9b   :  { %92 = vst.msk [vmem:[#allocation8] sm:$0xff] %vm53_vm0, %v91_v9 }
  0x9c   :  { %103 = dma.vmem_to_hbm [thread:$0]  %s99_s25, 128, %s101_s2, [#allocation5]  }
  0x9d   :  { %194 = dma.done.wait [#allocation5], 128  }
  0x9e   :  { %195 = vsyncadd [#allocation5], 4294967168 }
  0x9f   :  { %108 = vsyncpa [#allocation4], 1 }
  0xa0   :  { %109 = vsyncpa [#allocation7], 1 }
  0xa1   :  { %110 = vsyncpa [#allocation5], 1 }

</bundles_post_ra>
